<compile_context>
chip_gen: v7x
topology: tpu7x:2x2x1
jax: 0.10.0
libtpu: 0.0.40
codegen_flags: <defaults>
</compile_context>

<pallas_src>
import math
from functools import partial

import jax
import jax.numpy as jnp
from jax.experimental import pallas as pl
from jax.experimental.pallas import tpu as pltpu


def _round_up(x, m):
    return (x + m - 1) // m * m


# ----------------------------------------------------------------------------
# Generation-aware VMEM budgets
# ----------------------------------------------------------------------------
_VMEM_CAP = None


def _vmem_capacity_bytes():
    """Physical VMEM per core; conservative 64 MiB fallback (fits v7x)."""
    global _VMEM_CAP
    if _VMEM_CAP is None:
        cap = 64 * 1024 * 1024
        try:
            info = pltpu.get_tpu_info()
            cap = int(getattr(info, "vmem_capacity_bytes", cap) or cap)
        except Exception:
            pass
        _VMEM_CAP = cap
    return _VMEM_CAP


def _vmem_limit_bytes():
    # ~3/4 of physical, capped at 96 MiB: 96 MiB on v5e/v6e (128 MiB physical),
    # ~48 MiB on v7x (64 MiB physical).
    return int(min(96 * 1024 * 1024, (_vmem_capacity_bytes() * 3) // 4))


def _pick_channel_tile(c, cap=128, min_parallel=2):
    """Channel (sublane) tile: multiple of 8; keep >= 2 grid points when
    possible so v7x's two TensorCores both get work on the parallel axis."""
    if c < 8:
        return c                      # full-dim block (always legal)
    t = min(cap, c)
    t -= t % 8
    if t == 0:
        return c
    if -(-c // t) < min_parallel and c >= 16:
        t = max(8, (c // min_parallel) // 8 * 8)
    return t


def _pick_hw_tile(hw, bytes_per_col, budget_bytes):
    """Spatial (lane) tile: full dim if it fits the budget, else a 128-multiple
    tile (ragged last block handled by pl.cdiv grids)."""
    max_cols = max(128, (budget_bytes // max(bytes_per_col, 1)) // 128 * 128)
    if hw <= max_cols:
        return hw
    return max_cols


# ----------------------------------------------------------------------------
# Kernel A: fused |x| + global average pool   (B, C, HW) -> (B, C, 1) f32
# ----------------------------------------------------------------------------
def _abs_mean_kernel(x_ref, o_ref, acc_ref, *, inv_n, hw, needs_mask, lane_dense):
    k = pl.program_id(1)

    @pl.when(k == 0)
    def _():
        acc_ref[...] = jnp.zeros_like(acc_ref)

    a = jnp.abs(x_ref[...].astype(jnp.float32))          # (B, tc, thw)
    thw = a.shape[-1]
    if needs_mask:
        lane = jax.lax.broadcasted_iota(jnp.int32, a.shape, 2)
        a = jnp.where(k * thw + lane < hw, a, 0.0)

    if lane_dense:
        # Lane-dense accumulation: keep 128 lanes hot in the VMEM accumulator;
        # the 128 -> 1 collapse happens only once, in the finalize step.
        part = a[:, :, 0:128]
        for c in range(1, thw // 128):
            part = part + a[:, :, c * 128:(c + 1) * 128]
        acc_ref[...] += part
    else:
        acc_ref[...] += jnp.sum(a, axis=2, keepdims=True)

    @pl.when(k == pl.num_programs(1) - 1)
    def _():
        o_ref[...] = jnp.sum(acc_ref[...], axis=2, keepdims=True) * inv_n


def abs_global_mean(x3):
    B, C, HW = x3.shape
    limit = _vmem_limit_bytes()
    tc = _pick_channel_tile(C)
    thw = _pick_hw_tile(HW, bytes_per_col=B * tc * x3.dtype.itemsize,
                        budget_bytes=limit // 4)
    grid = (pl.cdiv(C, tc), pl.cdiv(HW, thw))
    # lane-dense path only when the tile is a 128-multiple and the unrolled
    # chunk loop stays small (compile-time bound)
    lane_dense = (thw % 128 == 0) and (thw // 128 <= 64)
    acc_lanes = 128 if lane_dense else 1
    return pl.pallas_call(
        partial(_abs_mean_kernel, inv_n=1.0 / HW, hw=HW,
                needs_mask=(HW % thw != 0), lane_dense=lane_dense),
        out_shape=jax.ShapeDtypeStruct((B, C, 1), jnp.float32),
        grid=grid,
        in_specs=[pl.BlockSpec((B, tc, thw), lambda i, k: (0, i, k))],
        out_specs=pl.BlockSpec((B, tc, 1), lambda i, k: (0, i, 0)),
        scratch_shapes=[pltpu.VMEM((B, tc, acc_lanes), jnp.float32)],
        compiler_params=pltpu.CompilerParams(
            dimension_semantics=("parallel", "arbitrary"),
            vmem_limit_bytes=limit),
    )(x3)


# ----------------------------------------------------------------------------
# Kernel B: fused bottleneck MLP + score product (tiny, single block, f32)
#   scores = mean_abs * sigmoid( relu(mean_abs @ W1eff + b1eff) @ W2 + b2 )
# ----------------------------------------------------------------------------
def _mlp_scores_kernel(m_ref, w1_ref, b1_ref, w2_ref, b2_ref, o_ref):
    m = m_ref[...]
    h = jnp.maximum(
        jnp.dot(m, w1_ref[...], preferred_element_type=jnp.float32) + b1_ref[...],
        0.0)
    y = jnp.dot(h, w2_ref[...], preferred_element_type=jnp.float32) + b2_ref[...]
    o_ref[...] = m * jax.nn.sigmoid(y)


def mlp_scores(mean_abs, params):
    B, C = mean_abs.shape
    w1p, b1p, w2p, b2p = params["w1p"], params["b1p"], params["w2p"], params["b2p"]
    Cp, C8p = w1p.shape
    Bp = _round_up(max(B, 8), 8)
    m = jnp.pad(mean_abs, ((0, Bp - B), (0, Cp - C)))   # only the tiny (B,C) pad per call
    out = pl.pallas_call(
        _mlp_scores_kernel,
        out_shape=jax.ShapeDtypeStruct((Bp, Cp), jnp.float32),
        grid=(1,),
        in_specs=[
            pl.BlockSpec((Bp, Cp), lambda i: (0, 0)),
            pl.BlockSpec((Cp, C8p), lambda i: (0, 0)),
            pl.BlockSpec((1, C8p), lambda i: (0, 0)),
            pl.BlockSpec((C8p, Cp), lambda i: (0, 0)),
            pl.BlockSpec((1, Cp), lambda i: (0, 0)),
        ],
        out_specs=pl.BlockSpec((Bp, Cp), lambda i: (0, 0)),
        compiler_params=pltpu.CompilerParams(
            dimension_semantics=("arbitrary",),
            vmem_limit_bytes=_vmem_limit_bytes()),
    )(m, w1p, b1p, w2p, b2p)
    return out[:B, :C]


# ----------------------------------------------------------------------------
# Kernel C: fused shrink application (streams x in native dtype)
#   thresh = max_over_batch(|x| - scores);  out = x + sign(x) * thresh
# ----------------------------------------------------------------------------
def _shrink_apply_kernel(x_ref, s_ref, o_ref):
    xf = x_ref[...].astype(jnp.float32)                  # (B, tc, thw), f32 math
    diff = jnp.abs(xf) - s_ref[...]                      # broadcast (B, tc, 1)
    thresh = jnp.max(diff, axis=0, keepdims=True)        # (1, tc, thw): max over batch
    # sign(x) * thresh via sign-bit XOR (cheap VPU bit ops instead of 2 cmp + 2 sel + mul)
    signbit = pltpu.bitcast(xf, jnp.uint32) & jnp.uint32(0x80000000)
    signed_t = pltpu.bitcast(pltpu.bitcast(thresh, jnp.uint32) ^ signbit,
                             jnp.float32)
    # preserve torch.sign(0) == 0
    out = xf + jnp.where(xf == 0.0, 0.0, signed_t)
    o_ref[...] = out.astype(o_ref.dtype)


def shrink_apply(x3, scores3):
    B, C, HW = x3.shape
    limit = _vmem_limit_bytes()
    tc = _pick_channel_tile(C)
    thw = _pick_hw_tile(HW, bytes_per_col=2 * B * tc * x3.dtype.itemsize,
                        budget_bytes=limit // 8)          # x + out, double-buffered
    grid = (pl.cdiv(C, tc), pl.cdiv(HW, thw))
    return pl.pallas_call(
        _shrink_apply_kernel,
        out_shape=jax.ShapeDtypeStruct((B, C, HW), x3.dtype),
        grid=grid,
        in_specs=[
            pl.BlockSpec((B, tc, thw), lambda i, j: (0, i, j)),
            pl.BlockSpec((B, tc, 1), lambda i, j: (0, i, 0)),
        ],
        out_specs=pl.BlockSpec((B, tc, thw), lambda i, j: (0, i, j)),
        compiler_params=pltpu.CompilerParams(
            dimension_semantics=("parallel", "parallel"),
            vmem_limit_bytes=limit),
    )(x3, scores3)


# ----------------------------------------------------------------------------
# Parameter init (BN folded into Linear1; MXU padding done ONCE here) + forward
# ----------------------------------------------------------------------------
def shrink_init(key, c1, eps=1e-5):
    c8 = c1 // 8
    k1, k2, k3, k4, k5, k6 = jax.random.split(key, 6)
    w1 = jax.random.normal(k1, (c8, c1), jnp.float32) / math.sqrt(c1)
    b1 = 0.1 * jax.random.normal(k2, (c8,), jnp.float32)
    gamma = 1.0 + 0.1 * jax.random.normal(k3, (c8,), jnp.float32)
    beta = 0.1 * jax.random.normal(k4, (c8,), jnp.float32)
    running_mean = jnp.zeros((c8,), jnp.float32)
    running_var = jnp.ones((c8,), jnp.float32)
    w2 = jax.random.normal(k5, (c1, c8), jnp.float32) / math.sqrt(c8)
    b2 = 0.1 * jax.random.normal(k6, (c1,), jnp.float32)
    # Fold BatchNorm1d (eval / running-stat semantics) into Linear1:
    scale = gamma / jnp.sqrt(running_var + eps)
    w1_eff = (w1 * scale[:, None]).T               # (c1, c8) for mean_abs @ w
    b1_eff = (b1 - running_mean) * scale + beta    # (c8,)
    w2_eff = w2.T                                  # (c8, c1)
    # Pre-pad once to MXU-friendly shapes for Kernel B (no per-forward pads).
    Cp = _round_up(c1, 128)
    C8p = _round_up(c8, 128)
    w1p = jnp.pad(w1_eff, ((0, Cp - c1), (0, C8p - c8)))
    b1p = jnp.pad(b1_eff.reshape(1, c8), ((0, 0), (0, C8p - c8)))
    w2p = jnp.pad(w2_eff, ((0, C8p - c8), (0, Cp - c1)))
    b2p = jnp.pad(b2.reshape(1, c1), ((0, 0), (0, Cp - c1)))
    return dict(w1=w1_eff, b1=b1_eff, w2=w2_eff, b2=b2,
                w1p=w1p, b1p=b1p, w2p=w2p, b2p=b2p)


def shrink_forward(x_nchw, params):
    B, C, H, W = x_nchw.shape
    x3 = x_nchw.reshape(B, C, H * W)                      # native dtype, no host upcast
    mean_abs = abs_global_mean(x3)                        # (B, C, 1) f32
    scores = mlp_scores(mean_abs.reshape(B, C), params)   # (B, C)   f32
    out = shrink_apply(x3, scores.reshape(B, C, 1))       # (B, C, HW) in x.dtype
    return out.reshape(B, C, H, W)


def _shrink_ref(x, params):
    """Pure-JAX reference (same folded parameters)."""
    xf = x.astype(jnp.float32)
    a = jnp.abs(xf)
    mean_abs = jnp.mean(a, axis=(2, 3))                                 # (B, C)
    h = jnp.maximum(mean_abs @ params["w1"] + params["b1"], 0.0)
    s = jax.nn.sigmoid(h @ params["w2"] + params["b2"])                 # (B, C)
    scores = (mean_abs * s)[:, :, None, None]
    thresh = jnp.max(a - scores, axis=0)                                # (C, H, W)
    return (xf + jnp.sign(xf) * thresh[None]).astype(x.dtype)


if __name__ == "__main__":
    B, c1, H, W = 2, 32, 16, 16
    key = jax.random.PRNGKey(0)
    kx, kp = jax.random.split(key)
    x = jax.random.normal(kx, (B, c1, H, W), jnp.float32)
    params = shrink_init(kp, c1)

    fwd = jax.jit(shrink_forward)
    out = jax.block_until_ready(fwd(x, params))

    assert out.shape == (B, c1, H, W), out.shape
    assert out.dtype == x.dtype
    assert bool(jnp.all(jnp.isfinite(out)))
    ref = _shrink_ref(x, params)
    assert bool(jnp.allclose(out, ref, atol=2e-2, rtol=2e-2)), float(
        jnp.max(jnp.abs(out - ref)))

    # Native-dtype streaming path (bf16): shape/dtype/finiteness smoke test.
    xb = x.astype(jnp.bfloat16)
    outb = jax.block_until_ready(fwd(xb, params))
    assert outb.shape == (B, c1, H, W) and outb.dtype == jnp.bfloat16
    assert bool(jnp.all(jnp.isfinite(outb.astype(jnp.float32))))

    print("KERNEL_OK")
</pallas_src>

<mosaic_0001>
module attributes {stable_mosaic.version = 11 : i64} {
  func.func @_abs_mean_kernel(%arg0: i32, %arg1: i32, %arg2: memref<2x16x256xf32, #tpu.memory_space<vmem>>, %arg3: memref<2x16x1xf32, #tpu.memory_space<vmem>>, %arg4: memref<2x16x128xf32, #tpu.memory_space<vmem>>) attributes {dimension_semantics = [#tpu.dimension_semantics<parallel>, #tpu.dimension_semantics<arbitrary>], iteration_bounds = array<i64: 2, 1>, scalar_prefetch = 0 : i64, scratch_operands = 1 : i64, tpu.core_type = #tpu.core_type<tc>, window_params = [{transform_indices = @transform_0, window_bounds = array<i64: 2, 16, 256>}, {transform_indices = @transform_1, window_bounds = array<i64: 2, 16, 1>}]} {
    %c0_i32 = arith.constant 0 : i32
    %0 = arith.cmpi eq, %arg1, %c0_i32 : i32
    %1 = arith.extui %0 : i1 to i32
    %c0_i32_0 = arith.constant 0 : i32
    %2 = arith.cmpi ne, %1, %c0_i32_0 : i32
    scf.if %2 {
      %cst = arith.constant 0.000000e+00 : f32
      %14 = vector.broadcast %cst : f32 to vector<2x16x128xf32>
      %c0_11 = arith.constant 0 : index
      %c0_12 = arith.constant 0 : index
      %c0_13 = arith.constant 0 : index
      %15 = vector.load %arg4[%c0_11, %c0_12, %c0_13] : memref<2x16x128xf32, #tpu.memory_space<vmem>>, vector<2x16x128xf32>
      tpu.vector_store %arg4[%c0_11, %c0_12, %c0_13], %14 {strides = array<i32>} : memref<2x16x128xf32, #tpu.memory_space<vmem>>, vector<2x16x128xf32>,
    } else {
    }
    %c0 = arith.constant 0 : index
    %c0_1 = arith.constant 0 : index
    %c0_2 = arith.constant 0 : index
    %3 = vector.load %arg2[%c0, %c0_1, %c0_2] : memref<2x16x256xf32, #tpu.memory_space<vmem>>, vector<2x16x256xf32>
    %4 = math.absf %3 : vector<2x16x256xf32>
    %5 = vector.extract_strided_slice %4 {offsets = [0, 0, 0], sizes = [2, 16, 128], strides = [1, 1, 1]} : vector<2x16x256xf32> to vector<2x16x128xf32>
    %6 = vector.extract_strided_slice %4 {offsets = [0, 0, 128], sizes = [2, 16, 128], strides = [1, 1, 1]} : vector<2x16x256xf32> to vector<2x16x128xf32>
    %7 = arith.addf %5, %6 : vector<2x16x128xf32>
    %c0_3 = arith.constant 0 : index
    %c0_4 = arith.constant 0 : index
    %c0_5 = arith.constant 0 : index
    %8 = vector.load %arg4[%c0_3, %c0_4, %c0_5] : memref<2x16x128xf32, #tpu.memory_space<vmem>>, vector<2x16x128xf32>
    %9 = arith.addf %8, %7 : vector<2x16x128xf32>
    %c0_6 = arith.constant 0 : index
    %c0_7 = arith.constant 0 : index
    %c0_8 = arith.constant 0 : index
    %10 = vector.load %arg4[%c0_6, %c0_7, %c0_8] : memref<2x16x128xf32, #tpu.memory_space<vmem>>, vector<2x16x128xf32>
    tpu.vector_store %arg4[%c0_6, %c0_7, %c0_8], %9 {strides = array<i32>} : memref<2x16x128xf32, #tpu.memory_space<vmem>>, vector<2x16x128xf32>,
    %c0_i32_9 = arith.constant 0 : i32
    %11 = arith.cmpi eq, %arg1, %c0_i32_9 : i32
    %12 = arith.extui %11 : i1 to i32
    %c0_i32_10 = arith.constant 0 : i32
    %13 = arith.cmpi ne, %12, %c0_i32_10 : i32
    scf.if %13 {
      %c0_11 = arith.constant 0 : index
      %c0_12 = arith.constant 0 : index
      %c0_13 = arith.constant 0 : index
      %14 = vector.load %arg4[%c0_11, %c0_12, %c0_13] : memref<2x16x128xf32, #tpu.memory_space<vmem>>, vector<2x16x128xf32>
      %cst = arith.constant dense<0.000000e+00> : vector<2x16xf32>
      %15 = vector.multi_reduction <add>, %14, %cst [2] : vector<2x16x128xf32> to vector<2x16xf32>
      %16 = vector.shape_cast %15 : vector<2x16xf32> to vector<2x16x1xf32>
      %cst_14 = arith.constant 3.906250e-03 : f32
      %17 = vector.broadcast %cst_14 : f32 to vector<2x16x1xf32>
      %18 = arith.mulf %16, %17 : vector<2x16x1xf32>
      %c0_15 = arith.constant 0 : index
      %c0_16 = arith.constant 0 : index
      %c0_17 = arith.constant 0 : index
      %19 = vector.load %arg3[%c0_15, %c0_16, %c0_17] : memref<2x16x1xf32, #tpu.memory_space<vmem>>, vector<2x16x1xf32>
      tpu.vector_store %arg3[%c0_15, %c0_16, %c0_17], %18 {strides = array<i32>} : memref<2x16x1xf32, #tpu.memory_space<vmem>>, vector<2x16x1xf32>,
    } else {
    }
    return
  }
  func.func @transform_0(%arg0: i32, %arg1: i32) -> (i32, i32, i32) {
    %c0_i32 = arith.constant 0 : i32
    %c0_i32_0 = arith.constant 0 : i32
    return %c0_i32, %arg0, %arg1 : i32, i32, i32
  }
  func.func @transform_1(%arg0: i32, %arg1: i32) -> (i32, i32, i32) {
    %c0_i32 = arith.constant 0 : i32
    %c0_i32_0 = arith.constant 0 : i32
    %c0_i32_1 = arith.constant 0 : i32
    return %c0_i32, %arg0, %c0_i32_0 : i32, i32, i32
  }
}

module attributes {stable_mosaic.version = 11 : i64} {
  func.func @_mlp_scores_kernel(%arg0: i32, %arg1: memref<8x128xf32, #tpu.memory_space<vmem>>, %arg2: memref<128x128xf32, #tpu.memory_space<vmem>>, %arg3: memref<1x128xf32, #tpu.memory_space<vmem>>, %arg4: memref<128x128xf32, #tpu.memory_space<vmem>>, %arg5: memref<1x128xf32, #tpu.memory_space<vmem>>, %arg6: memref<8x128xf32, #tpu.memory_space<vmem>>) attributes {dimension_semantics = [#tpu.dimension_semantics<arbitrary>], iteration_bounds = array<i64: 1>, scalar_prefetch = 0 : i64, scratch_operands = 0 : i64, tpu.core_type = #tpu.core_type<tc>, window_params = [{pipeline_mode = #tpu.pipeline_mode<synchronous>, transform_indices = @transform_0, window_bounds = array<i64: 8, 128>}, {pipeline_mode = #tpu.pipeline_mode<synchronous>, transform_indices = @transform_1, window_bounds = array<i64: 128, 128>}, {pipeline_mode = #tpu.pipeline_mode<synchronous>, transform_indices = @transform_2, window_bounds = array<i64: 1, 128>}, {pipeline_mode = #tpu.pipeline_mode<synchronous>, transform_indices = @transform_3, window_bounds = array<i64: 128, 128>}, {pipeline_mode = #tpu.pipeline_mode<synchronous>, transform_indices = @transform_4, window_bounds = array<i64: 1, 128>}, {pipeline_mode = #tpu.pipeline_mode<synchronous>, transform_indices = @transform_5, window_bounds = array<i64: 8, 128>}]} {
    %c0 = arith.constant 0 : index
    %c0_0 = arith.constant 0 : index
    %0 = vector.load %arg1[%c0, %c0_0] : memref<8x128xf32, #tpu.memory_space<vmem>>, vector<8x128xf32>
    %c0_1 = arith.constant 0 : index
    %c0_2 = arith.constant 0 : index
    %1 = vector.load %arg2[%c0_1, %c0_2] : memref<128x128xf32, #tpu.memory_space<vmem>>, vector<128x128xf32>
    %cst = arith.constant dense<0.000000e+00> : vector<8x128xf32>
    %2 = tpu.matmul %0, %1, %cst {dimension_numbers = #tpu.dot_dimension_numbers<[1], [0], [0], [1], [0, 0, 1, 1], [], []>} : vector<8x128xf32>, vector<128x128xf32>, vector<8x128xf32> -> vector<8x128xf32>
    %c0_3 = arith.constant 0 : index
    %c0_4 = arith.constant 0 : index
    %3 = vector.load %arg3[%c0_3, %c0_4] : memref<1x128xf32, #tpu.memory_space<vmem>>, vector<1x128xf32>
    %4 = vector.broadcast %3 : vector<1x128xf32> to vector<8x128xf32>
    %5 = arith.addf %2, %4 : vector<8x128xf32>
    %cst_5 = arith.constant 0.000000e+00 : f32
    %6 = vector.broadcast %cst_5 : f32 to vector<8x128xf32>
    %7 = arith.maximumf %5, %6 : vector<8x128xf32>
    %c0_6 = arith.constant 0 : index
    %c0_7 = arith.constant 0 : index
    %8 = vector.load %arg4[%c0_6, %c0_7] : memref<128x128xf32, #tpu.memory_space<vmem>>, vector<128x128xf32>
    %cst_8 = arith.constant dense<0.000000e+00> : vector<8x128xf32>
    %9 = tpu.matmul %7, %8, %cst_8 {dimension_numbers = #tpu.dot_dimension_numbers<[1], [0], [0], [1], [0, 0, 1, 1], [], []>} : vector<8x128xf32>, vector<128x128xf32>, vector<8x128xf32> -> vector<8x128xf32>
    %c0_9 = arith.constant 0 : index
    %c0_10 = arith.constant 0 : index
    %10 = vector.load %arg5[%c0_9, %c0_10] : memref<1x128xf32, #tpu.memory_space<vmem>>, vector<1x128xf32>
    %11 = vector.broadcast %10 : vector<1x128xf32> to vector<8x128xf32>
    %12 = arith.addf %9, %11 : vector<8x128xf32>
    %13 = arith.negf %12 : vector<8x128xf32>
    %14 = math.exp %13 : vector<8x128xf32>
    %cst_11 = arith.constant 1.000000e+00 : f32
    %15 = vector.broadcast %cst_11 : f32 to vector<8x128xf32>
    %16 = arith.addf %15, %14 : vector<8x128xf32>
    %17 = arith.divf %15, %16 : vector<8x128xf32>
    %18 = arith.mulf %0, %17 : vector<8x128xf32>
    %c0_12 = arith.constant 0 : index
    %c0_13 = arith.constant 0 : index
    %19 = vector.load %arg6[%c0_12, %c0_13] : memref<8x128xf32, #tpu.memory_space<vmem>>, vector<8x128xf32>
    tpu.vector_store %arg6[%c0_12, %c0_13], %18 {strides = array<i32>} : memref<8x128xf32, #tpu.memory_space<vmem>>, vector<8x128xf32>,
    return
  }
  func.func @transform_0(%arg0: i32) -> (i32, i32) {
    %c0_i32 = arith.constant 0 : i32
    %c0_i32_0 = arith.constant 0 : i32
    %c0_i32_1 = arith.constant 0 : i32
    return %c0_i32, %c0_i32_0 : i32, i32
  }
  func.func @transform_1(%arg0: i32) -> (i32, i32) {
    %c0_i32 = arith.constant 0 : i32
    %c0_i32_0 = arith.constant 0 : i32
    %c0_i32_1 = arith.constant 0 : i32
    return %c0_i32, %c0_i32_0 : i32, i32
  }
  func.func @transform_2(%arg0: i32) -> (i32, i32) {
    %c0_i32 = arith.constant 0 : i32
    %c0_i32_0 = arith.constant 0 : i32
    %c0_i32_1 = arith.constant 0 : i32
    return %c0_i32, %c0_i32_0 : i32, i32
  }
  func.func @transform_3(%arg0: i32) -> (i32, i32) {
    %c0_i32 = arith.constant 0 : i32
    %c0_i32_0 = arith.constant 0 : i32
    %c0_i32_1 = arith.constant 0 : i32
    return %c0_i32, %c0_i32_0 : i32, i32
  }
  func.func @transform_4(%arg0: i32) -> (i32, i32) {
    %c0_i32 = arith.constant 0 : i32
    %c0_i32_0 = arith.constant 0 : i32
    %c0_i32_1 = arith.constant 0 : i32
    return %c0_i32, %c0_i32_0 : i32, i32
  }
  func.func @transform_5(%arg0: i32) -> (i32, i32) {
    %c0_i32 = arith.constant 0 : i32
    %c0_i32_0 = arith.constant 0 : i32
    %c0_i32_1 = arith.constant 0 : i32
    return %c0_i32, %c0_i32_0 : i32, i32
  }
}

module attributes {stable_mosaic.version = 11 : i64} {
  func.func @_shrink_apply_kernel(%arg0: i32, %arg1: i32, %arg2: memref<2x16x256xf32, #tpu.memory_space<vmem>>, %arg3: memref<2x16x1xf32, #tpu.memory_space<vmem>>, %arg4: memref<2x16x256xf32, #tpu.memory_space<vmem>>) attributes {dimension_semantics = [#tpu.dimension_semantics<parallel>, #tpu.dimension_semantics<parallel>], iteration_bounds = array<i64: 2, 1>, scalar_prefetch = 0 : i64, scratch_operands = 0 : i64, tpu.core_type = #tpu.core_type<tc>, window_params = [{transform_indices = @transform_0, window_bounds = array<i64: 2, 16, 256>}, {transform_indices = @transform_1, window_bounds = array<i64: 2, 16, 1>}, {transform_indices = @transform_2, window_bounds = array<i64: 2, 16, 256>}]} {
    %c0 = arith.constant 0 : index
    %c0_0 = arith.constant 0 : index
    %c0_1 = arith.constant 0 : index
    %0 = vector.load %arg2[%c0, %c0_0, %c0_1] : memref<2x16x256xf32, #tpu.memory_space<vmem>>, vector<2x16x256xf32>
    %1 = math.absf %0 : vector<2x16x256xf32>
    %c0_2 = arith.constant 0 : index
    %c0_3 = arith.constant 0 : index
    %c0_4 = arith.constant 0 : index
    %2 = vector.load %arg3[%c0_2, %c0_3, %c0_4] : memref<2x16x1xf32, #tpu.memory_space<vmem>>, vector<2x16x1xf32>
    %3 = vector.broadcast %2 : vector<2x16x1xf32> to vector<2x16x256xf32>
    %4 = arith.subf %1, %3 : vector<2x16x256xf32>
    %cst = arith.constant dense<0xFF800000> : vector<16x256xf32>
    %5 = vector.multi_reduction <maximumf>, %4, %cst [0] : vector<2x16x256xf32> to vector<16x256xf32>
    %6 = vector.shape_cast %5 : vector<16x256xf32> to vector<1x16x256xf32>
    %7 = tpu.bitcast %0 : vector<2x16x256xf32> -> vector<2x16x256xi32>
    %c-2147483648_i32 = arith.constant -2147483648 : i32
    %8 = vector.broadcast %c-2147483648_i32 : i32 to vector<2x16x256xi32>
    %9 = arith.andi %7, %8 : vector<2x16x256xi32>
    %10 = tpu.bitcast %6 : vector<1x16x256xf32> -> vector<1x16x256xi32>
    %11 = vector.broadcast %10 : vector<1x16x256xi32> to vector<2x16x256xi32>
    %12 = arith.xori %11, %9 : vector<2x16x256xi32>
    %13 = tpu.bitcast %12 : vector<2x16x256xi32> -> vector<2x16x256xf32>
    %cst_5 = arith.constant 0.000000e+00 : f32
    %14 = vector.broadcast %cst_5 : f32 to vector<2x16x256xf32>
    %15 = arith.cmpf oeq, %0, %14 : vector<2x16x256xf32>
    %cst_6 = arith.constant 0.000000e+00 : f32
    %16 = vector.broadcast %cst_6 : f32 to vector<2x16x256xf32>
    %17 = arith.select %15, %16, %13 : vector<2x16x256xi1>, vector<2x16x256xf32>
    %18 = arith.addf %0, %17 : vector<2x16x256xf32>
    %c0_7 = arith.constant 0 : index
    %c0_8 = arith.constant 0 : index
    %c0_9 = arith.constant 0 : index
    %19 = vector.load %arg4[%c0_7, %c0_8, %c0_9] : memref<2x16x256xf32, #tpu.memory_space<vmem>>, vector<2x16x256xf32>
    tpu.vector_store %arg4[%c0_7, %c0_8, %c0_9], %18 {strides = array<i32>} : memref<2x16x256xf32, #tpu.memory_space<vmem>>, vector<2x16x256xf32>,
    return
  }
  func.func @transform_0(%arg0: i32, %arg1: i32) -> (i32, i32, i32) {
    %c0_i32 = arith.constant 0 : i32
    %c0_i32_0 = arith.constant 0 : i32
    return %c0_i32, %arg0, %arg1 : i32, i32, i32
  }
  func.func @transform_1(%arg0: i32, %arg1: i32) -> (i32, i32, i32) {
    %c0_i32 = arith.constant 0 : i32
    %c0_i32_0 = arith.constant 0 : i32
    %c0_i32_1 = arith.constant 0 : i32
    return %c0_i32, %arg0, %c0_i32_0 : i32, i32, i32
  }
  func.func @transform_2(%arg0: i32, %arg1: i32) -> (i32, i32, i32) {
    %c0_i32 = arith.constant 0 : i32
    %c0_i32_0 = arith.constant 0 : i32
    return %c0_i32, %arg0, %arg1 : i32, i32, i32
  }
}

</mosaic_0001>

<bundles_post_ra>
// kernel: shrink_forward.3
= control target key start
LH: loop header
LB: loop body
LE: loop exit
PB: predicated region body
PF: predicated region fallthrough
CT: control target
= control target key end

     0   :  { %s460_s6 = smov 0   ;;  %s462_s7 = smov 0   ;;  %s532_s0 = inlined_call_operand.vmem [shape: f32[2,32,256], index: 0, kind: input, shape index: {}]   ;;  %s533_s1 = inlined_call_operand.vmem [shape: f32[2,32,1], index: 1, kind: output, shape index: {}]  }
   0x1   :  { %s464_s8 = smov 0   ;;  %s466_s9 = smov 0  }
   0x2   :  { %s468_s10 = smov 0  }
   0x3 LB: > { %s23_s11 = sadd.s32 1, %s444_s9  ;;  %s351_s12 = sadd.s32 4294967295, %s448_s10   ;;  %s448_s10 = sphi %s468_s10, %s11_s10   ;;  %s444_s9 = sphi %s466_s9, %s538_s9   ;;  %s440_s8 = sphi %s464_s8, %s537_s8   ;;  %s436_s7 = sphi %s462_s7, %s536_s7   ;;  %s432_s6 = sphi %s460_s6, %s535_s6  }
   0x4   : > { %p25_p0 = scmp.ge.s32.totalorder %s23_s11, 2  ;;  %p39_p1 = scmp.ne.s32.totalorder %s436_s7, %s432_s6 }
   0x5   : > { %p40_p2 = scmp.eq.s32.totalorder %s448_s10, 0  ;;  %p69_p4 = scmp.eq.s32.totalorder %s351_s12, 1 }
   0x6   : > { %s540_s11 = smov (%p25_p0, %s23_s11), 0  ;;  %s32_s14 = sadd.s32 1, %s436_s7 }
   0x7   : > { %p41_p3 = por %p40_p2, %p39_p1  ;;  %s27_s13 = ssub.s32 %s444_s9, %s540_s11 }
   0x8   : > { %p30_p5 = scmp.eq.s32.totalorder %s27_s13, 0  ;;  %p495_p6 = por %p69_p4, %p39_p1 }
   0x9   : > { %p354_p7 = scmp.ge.s32.totalorder %s448_s10, 2 }
   0xa   : > { %s500_s16 = scalar_select %p30_p5, %s436_s7, %s32_s14  }
   0xb   : > { %91 = sbr.rel (%p354_p7) target bundleno = 26 (0x1a), region = 16 }
  0x12   : > { %94 = sbr.rel (!%p41_p3) target bundleno = 26 (0x1a), region = 20  ;;  %s96_s17 = sand.u32 (%p41_p3), 1, %s436_s7  }
  0x13   : > { %s368_s18 = sshll.u32 (%p41_p3), %s444_s9, 5  ;;  %s355_s19 = sshll.u32 (%p41_p3), %s96_s17, 6 }
  0x14   : > { %s104_s22 = scalar_lea.vmem (%p41_p3), %s532_s0, %s368_s18  ;;  %s98_s23 = scalar_lea.vmem (%p41_p3), [#allocation3], %s355_s19 }
  0x15   : > { %v117_v0 = vld [vmem:[%s104_s22] sm:$0xff] (%p41_p3)  ;;  %v119_v1 = vld [vmem:[%s104_s22 + $0x8] sm:$0xff] (%p41_p3)  ;;  %v121_v2 = vld [vmem:[%s104_s22 + $0x10] sm:$0xff] (%p41_p3) }
  0x16   : > { %118 = vst [vmem:[%s98_s23] sm:$0xff] (%p41_p3), %v117_v0  ;;  %120 = vst [vmem:[%s98_s23 + $0x8] sm:$0xff] (%p41_p3), %v119_v1  ;;  %v123_v3 = vld [vmem:[%s104_s22 + $0x18] sm:$0xff] (%p41_p3)  ;;  %v125_v4 = vld [vmem:[%s104_s22 + $0x40] sm:$0xff] (%p41_p3) }
  0x17   : > { %122 = vst [vmem:[%s98_s23 + $0x10] sm:$0xff] (%p41_p3), %v121_v2  ;;  %v127_v5 = vld [vmem:[%s104_s22 + $0x48] sm:$0xff] (%p41_p3)  ;;  %124 = vst [vmem:[%s98_s23 + $0x18] sm:$0xff] (%p41_p3), %v123_v3  ;;  %v129_v6 = vld [vmem:[%s104_s22 + $0x50] sm:$0xff] (%p41_p3) }
  0x18   : > { %126 = vst [vmem:[%s98_s23 + $0x20] sm:$0xff] (%p41_p3), %v125_v4  ;;  %128 = vst [vmem:[%s98_s23 + $0x28] sm:$0xff] (%p41_p3), %v127_v5  ;;  %v131_v7 = vld [vmem:[%s104_s22 + $0x58] sm:$0xff] (%p41_p3) }
  0x19   : > { %130 = vst [vmem:[%s98_s23 + $0x30] sm:$0xff] %v129_v6  ;;  %132 = vst [vmem:[%s98_s23 + $0x38] sm:$0xff] %v131_v7 }
  0x1a PF: > { %p359_p8 = scmp.ge.s32.totalorder %s448_s10, 1  ;;  %p137_p9 = scmp.lt.s32.totalorder %s448_s10, 3 }
  0x1c   : > { %p138_p10 = pnand %p359_p8, %p137_p9 }
  0x1d   : > { %s144_s24 = sand.u32 (!%p138_p10), 1, %s432_s6   ;;  %vm224_vm0 = vcmask (!%p138_p10), 7168  }
  0x1e   : > { %141 = sbr.rel (%p138_p10) target bundleno = 195 (0xc3), region = 43  ;;  %s360_s25 = sshll.u32 (!%p138_p10), %s144_s24, 6 }
  0x1f   : > { %s146_s26 = scalar_lea.vmem (!%p138_p10), [#allocation3], %s360_s25  ;;  %s361_s27 = sshll.u32 (!%p138_p10), %s144_s24, 5 }
  0x20   : > { %v177_v8 = vld [vmem:[%s146_s26 + $0x20] sm:$0xff] (!%p138_p10)  ;;  %v178_v9 = vld [vmem:[%s146_s26 + $0x28] sm:$0xff] (!%p138_p10)  ;;  %v179_v14 = vld [vmem:[%s146_s26 + $0x30] sm:$0xff] (!%p138_p10)  ;;  %s161_s28 = scalar_lea.vmem (!%p138_p10), [#allocation4], %s361_s27 }
  0x21   : > { %v173_v10 = vld [vmem:[%s146_s26] sm:$0xff] (!%p138_p10)  ;;  %v185_v11 = vand.u32 (!%p138_p10), 2147483647, %v177_v8  ;;  %v186_v12 = vand.u32 (!%p138_p10), 2147483647, %v178_v9  ;;  %v174_v13 = vld [vmem:[%s146_s26 + $0x8] sm:$0xff] (!%p138_p10) }
  0x22   : > { %v181_v15 = vand.u32 (!%p138_p10), 2147483647, %v173_v10  ;;  %v182_v16 = vand.u32 (!%p138_p10), 2147483647, %v174_v13  ;;  %v180_v17 = vld [vmem:[%s146_s26 + $0x38] sm:$0xff] (!%p138_p10)  ;;  %v175_v18 = vld [vmem:[%s146_s26 + $0x10] sm:$0xff] (!%p138_p10) }
  0x23   : > { %v191_v19 = vadd.f32 (!%p138_p10), %v186_v12, %v185_v11  ;;  %v187_v20 = vand.u32 (!%p138_p10), 2147483647, %v179_v14  ;;  %v188_v21 = vand.u32 (!%p138_p10), 2147483647, %v180_v17  ;;  %v176_v22 = vld [vmem:[%s146_s26 + $0x18] sm:$0xff] (!%p138_p10) }
  0x24   : > { %v189_v23 = vadd.f32 (!%p138_p10), %v182_v16, %v181_v15  ;;  %v183_v24 = vand.u32 (!%p138_p10), 2147483647, %v175_v18  ;;  %v184_v25 = vand.u32 (!%p138_p10), 2147483647, %v176_v22 }
  0x25   : > { %216 = vadd.xlane.f32.xlu1 %v191_v19  ;;  %v192_v26 = vadd.f32 %v188_v21, %v187_v20  ;;  %s369_s29 = sshll.u32 (%p495_p6), %s440_s8, 4 }
  0x26   : > { %212 = vadd.xlane.f32.xlu0 %v189_v23  ;;  %v190_v27 = vadd.f32 %v184_v25, %v183_v24  ;;  %s238_s3 = scalar_lea.vmem (%p495_p6), %s533_s1, %s369_s29 }
  0x29   : > { %218 = vadd.xlane.f32.xlu1 %v192_v26 }
  0x2a   : > { %214 = vadd.xlane.f32.xlu0 %v190_v27 }
  0xb2   : > { %v217_v28 = vpop.xlane.xlu1 %216 }
  0xb3   : > { %v222_v29 = vmul.f32 0.00390625, %v217_v28  ;;  %v213_v30 = vpop.xlane.xlu0 %212 }
  0xb4   : > { %v220_v31 = vmul.f32 0.00390625, %v213_v30  ;;  %235 = sbr.rel (!%p495_p6) target bundleno = 195 (0xc3), region = 59 }
  0xb5   : > { %227 = vst.msk [vmem:[%s161_s28 + $0x10] sm:$0xff] %vm224_vm0, %v222_v29 }
  0xb6   : > { %225 = vst.msk [vmem:[%s161_s28] sm:$0xff] %vm224_vm0, %v220_v31  ;;  %v219_v32 = vpop.xlane.xlu1 %218 }
  0xb7   : > { %v223_v33 = vmul.f32 0.00390625, %v219_v32  ;;  %v215_v34 = vpop.xlane.xlu0 %214 }
  0xb8   : > { %v221_v35 = vmul.f32 0.00390625, %v215_v34 }
  0xb9   : > { %228 = vst.msk [vmem:[%s161_s28 + $0x18] sm:$0xff] %vm224_vm0, %v223_v33 }
  0xba   : > { %226 = vst.msk [vmem:[%s161_s28 + $0x8] sm:$0xff] %vm224_vm0, %v221_v35 }
  0xbc   : > { %v276_v38 = vld [vmem:[%s161_s28 + $0x10] sm:$0xff] }
  0xbd   : > { %v272_v36 = vld [vmem:[%s161_s28] sm:$0xff]  ;;  %277 = vst [vmem:[%s238_s3 + $0x20] sm:$0xff] %v276_v38 }
  0xbe   : > { %273 = vst [vmem:[%s238_s3] sm:$0xff] %v272_v36 }
  0xc0   : > { %v278_v39 = vld [vmem:[%s161_s28 + $0x18] sm:$0xff] }
  0xc1   : > { %v274_v37 = vld [vmem:[%s161_s28 + $0x8] sm:$0xff]  ;;  %279 = vst [vmem:[%s238_s3 + $0x28] sm:$0xff] %v278_v39 }
  0xc2   : > { %275 = vst [vmem:[%s238_s3 + $0x8] sm:$0xff] %v274_v37 }
  0xc3 PF: > { %s11_s10 = sadd.s32 1, %s448_s10   ;;  %s535_s6 = smov %s436_s7 }
  0xc4   : > { %p8_p11 = scmp.ge.s32.totalorder %s11_s10, 4   ;;  %s536_s7 = smov %s500_s16 }
  0xc5   : > { %s537_s8 = smov %s444_s9  ;;  %s538_s9 = smov %s540_s11 }
  0xc6   :  { %10 = sbr.rel (!%p8_p11) target bundleno = 3 (0x3), region = 128 }

// kernel: shrink_forward.5
= control target key start
LH: loop header
LB: loop body
LE: loop exit
PB: predicated region body
PF: predicated region fallthrough
CT: control target
= control target key end

     0   :  { %s641_s9 = smov 0   ;;  %s643_s10 = smov 0   ;;  %s764_s0 = inlined_call_operand.vmem [shape: f32[2,32,256], index: 0, kind: input, shape index: {}]   ;;  %s765_s1 = inlined_call_operand.vmem [shape: f32[2,32,1], index: 1, kind: input, shape index: {}]   ;;  %s766_s2 = inlined_call_operand.vmem [shape: f32[2,32,256], index: 2, kind: output, shape index: {}]  }
   0x1   :  { %s645_s11 = smov 0   ;;  %s647_s12 = smov 0  }
   0x2   :  { %s649_s13 = smov 0  }
   0x3 LB: > { %s24_s14 = sadd.s32 1, %s619_s12  ;;  %s516_s15 = sadd.s32 4294967295, %s623_s13   ;;  %s623_s13 = sphi %s649_s13, %s12_s13   ;;  %s619_s12 = sphi %s647_s12, %s772_s12   ;;  %s615_s11 = sphi %s645_s11, %s771_s11   ;;  %s611_s10 = sphi %s643_s10, %s770_s10   ;;  %s607_s9 = sphi %s641_s9, %s769_s9  }
   0x4   : > { %p26_p0 = scmp.ge.s32.totalorder %s24_s14, 2  ;;  %p40_p1 = scmp.ne.s32.totalorder %s611_s10, %s607_s9 }
   0x5   : > { %p41_p2 = scmp.eq.s32.totalorder %s623_s13, 0  ;;  %p98_p4 = scmp.eq.s32.totalorder %s516_s15, 1 }
   0x6   : > { %s774_s14 = smov (%p26_p0, %s24_s14), 0  ;;  %s33_s18 = sadd.s32 1, %s611_s10 }
   0x7   : > { %p673_p3 = por %p41_p2, %p40_p1  ;;  %s28_s17 = ssub.s32 %s619_s12, %s774_s14 }
   0x8   : > { %p31_p5 = scmp.eq.s32.totalorder %s28_s17, 0  ;;  %p680_p6 = por %p98_p4, %p40_p1 }
   0x9   : > { %p519_p7 = scmp.ge.s32.totalorder %s623_s13, 2 }
   0xa   : > { %s685_s20 = scalar_select %p31_p5, %s611_s10, %s33_s18  }
   0xb   : > { %120 = sbr.rel (%p519_p7) target bundleno = 33 (0x21), region = 16 }
  0x12   : > { %123 = sbr.rel (!%p673_p3) target bundleno = 26 (0x1a), region = 20  ;;  %s125_s21 = sand.u32 (%p673_p3), 1, %s611_s10  }
  0x13   : > { %s538_s22 = sshll.u32 (%p673_p3), %s619_s12, 5  ;;  %s520_s23 = sshll.u32 (%p673_p3), %s125_s21, 6 }
  0x14   : > { %s133_s26 = scalar_lea.vmem (%p673_p3), %s764_s0, %s538_s22  ;;  %s127_s27 = scalar_lea.vmem (%p673_p3), [#allocation2], %s520_s23 }
  0x15   : > { %v146_v0 = vld [vmem:[%s133_s26] sm:$0xff] (%p673_p3)  ;;  %v148_v1 = vld [vmem:[%s133_s26 + $0x8] sm:$0xff] (%p673_p3)  ;;  %v150_v2 = vld [vmem:[%s133_s26 + $0x10] sm:$0xff] (%p673_p3) }
  0x16   : > { %147 = vst [vmem:[%s127_s27] sm:$0xff] (%p673_p3), %v146_v0  ;;  %149 = vst [vmem:[%s127_s27 + $0x8] sm:$0xff] (%p673_p3), %v148_v1  ;;  %v152_v3 = vld [vmem:[%s133_s26 + $0x18] sm:$0xff] (%p673_p3)  ;;  %v154_v4 = vld [vmem:[%s133_s26 + $0x40] sm:$0xff] (%p673_p3) }
  0x17   : > { %151 = vst [vmem:[%s127_s27 + $0x10] sm:$0xff] (%p673_p3), %v150_v2  ;;  %v156_v5 = vld [vmem:[%s133_s26 + $0x48] sm:$0xff] (%p673_p3)  ;;  %153 = vst [vmem:[%s127_s27 + $0x18] sm:$0xff] (%p673_p3), %v152_v3  ;;  %v158_v6 = vld [vmem:[%s133_s26 + $0x50] sm:$0xff] (%p673_p3) }
  0x18   : > { %155 = vst [vmem:[%s127_s27 + $0x20] sm:$0xff] (%p673_p3), %v154_v4  ;;  %157 = vst [vmem:[%s127_s27 + $0x28] sm:$0xff] (%p673_p3), %v156_v5  ;;  %v160_v7 = vld [vmem:[%s133_s26 + $0x58] sm:$0xff] (%p673_p3) }
  0x19   : > { %159 = vst [vmem:[%s127_s27 + $0x30] sm:$0xff] %v158_v6  ;;  %161 = vst [vmem:[%s127_s27 + $0x38] sm:$0xff] %v160_v7 }
  0x1a PF: > { %167 = sbr.rel (!%p673_p3) target bundleno = 33 (0x21), region = 43  ;;  %s169_s28 = sand.u32 (%p673_p3), 1, %s611_s10  }
  0x1b   : > { %s539_s29 = sshll.u32 (%p673_p3), %s619_s12, 4  ;;  %s524_s30 = sshll.u32 (%p673_p3), %s169_s28, 5 }
  0x1c   : > { %s174_s5 = scalar_lea.vmem (%p673_p3), %s765_s1, %s539_s29  ;;  %s171_s6 = scalar_lea.vmem (%p673_p3), [#allocation3], %s524_s30 }
  0x1d   : > { %v208_v8 = vld [vmem:[%s174_s5] sm:$0xff] (%p673_p3)  ;;  %v210_v9 = vld [vmem:[%s174_s5 + $0x8] sm:$0xff] (%p673_p3) }
  0x1e   : > { %v212_v10 = vld [vmem:[%s174_s5 + $0x20] sm:$0xff] (%p673_p3)  ;;  %209 = vst [vmem:[%s171_s6] sm:$0xff] (%p673_p3), %v208_v8  ;;  %211 = vst [vmem:[%s171_s6 + $0x8] sm:$0xff] (%p673_p3), %v210_v9  ;;  %v214_v11 = vld [vmem:[%s174_s5 + $0x28] sm:$0xff] (%p673_p3) }
  0x1f   : > { %213 = vst [vmem:[%s171_s6 + $0x10] sm:$0xff] (%p673_p3), %v212_v10  ;;  %215 = vst [vmem:[%s171_s6 + $0x18] sm:$0xff] (%p673_p3), %v214_v11 }
  0x21 PF: > { %p527_p8 = scmp.ge.s32.totalorder %s623_s13, 1  ;;  %p220_p9 = scmp.lt.s32.totalorder %s623_s13, 3 }
  0x23   : > { %p221_p10 = pnand %p527_p8, %p220_p9 }
  0x24   : > { %s227_s7 = sand.u32 (!%p221_p10), 1, %s607_s9   ;;  %v625_v12 = vmov (!%p221_p10), 0  }
  0x25   : > { %224 = sbr.rel (%p221_p10) target bundleno = 193 (0xc1), region = 81  ;;  %584 = vset.pattern.permute.xlu1 (!%p221_p10), %v625_v12  ;;  %583 = vset.pattern.permute.xlu0 (!%p221_p10), %v625_v12  ;;  %s529_s8 = sshll.u32 (!%p221_p10), %s227_s7, 5 }
  0x26   : > { %s236_s15 = scalar_lea.vmem (!%p221_p10), [#allocation3], %s529_s8  ;;  %s705_s16 = sshll.u32 (!%p221_p10), %s227_s7, 6 }
  0x27   : > { %v281_v13 = vld [vmem:[%s236_s15 + $0x10] sm:$0xff] (!%p221_p10)  ;;  %v279_v14 = vld [vmem:[%s236_s15] sm:$0xff] (!%p221_p10)  ;;  %v282_v15 = vld [vmem:[%s236_s15 + $0x18] sm:$0xff] (!%p221_p10)  ;;  %s229_s17 = scalar_lea.vmem (!%p221_p10), [#allocation2], %s705_s16  ;;  %s721_s9 = scalar_lea.vmem (!%p221_p10), [#allocation4], %s705_s16 }
  0x28   : > { %295 = vperm.xlu1 (!%p221_p10), %584, %v281_v13   ;;  %285 = vperm.xlu0 (!%p221_p10), %583, %v279_v14   ;;  %v280_v16 = vld [vmem:[%s236_s15 + $0x8] sm:$0xff] (!%p221_p10)  ;;  %v267_v17 = vld [vmem:[%s229_s17 + $0x20] sm:$0xff] (!%p221_p10)  ;;  %v708_v25 = vld [vmem:[%s229_s17 + $0x30] sm:$0xff] (!%p221_p10) }
  0x29   : > { %v268_v18 = vld [vmem:[%s229_s17 + $0x28] sm:$0xff] (!%p221_p10)  ;;  %v263_v19 = vld [vmem:[%s229_s17] sm:$0xff] (!%p221_p10)  ;;  %v275_v21 = vand.u32 (!%p221_p10), 2147483647, %v267_v17  ;;  %v327_v28 = vand.u32 (!%p221_p10), 2147483648, %v267_v17  ;;  %v710_v29 = vld [vmem:[%s229_s17 + $0x38] sm:$0xff] (!%p221_p10) }
  0x2a   : > { %v264_v20 = vld [vmem:[%s229_s17 + $0x8] sm:$0xff] (!%p221_p10)  ;;  %v276_v22 = vand.u32 (!%p221_p10), 2147483647, %v268_v18  ;;  %v271_v23 = vand.u32 (!%p221_p10), 2147483647, %v263_v19  ;;  %v323_v26 = vand.u32 (!%p221_p10), 2147483648, %v263_v19 }
  0x2b   : > { %v272_v24 = vand.u32 (!%p221_p10), 2147483647, %v264_v20  ;;  %v324_v27 = vand.u32 (!%p221_p10), 2147483648, %v264_v20  ;;  %v265_v30 = vld [vmem:[%s229_s17 + $0x10] sm:$0xff] (!%p221_p10)  ;;  %v266_v31 = vld [vmem:[%s229_s17 + $0x18] sm:$0xff] (!%p221_p10)  ;;  %v328_v34 = vand.u32 (!%p221_p10), 2147483648, %v268_v18 }
  0x2c   : > { %300 = vperm.xlu1 %584, %v282_v15   ;;  %290 = vperm.xlu0 %583, %v280_v16   ;;  %vm351_vm0 = vcmp.eq.f32.partialorder %v263_v19, 0.0  ;;  %vm352_vm1 = vcmp.eq.f32.partialorder %v264_v20, 0.0  ;;  %v277_v35 = vand.u32 2147483647, %v708_v25  ;;  %v278_v40 = vand.u32 2147483647, %v710_v29 }
  0x2d   : > { %v273_v41 = vand.u32 2147483647, %v265_v30  ;;  %v274_v42 = vand.u32 2147483647, %v266_v31  ;;  %vm355_vm2 = vcmp.eq.f32.partialorder %v267_v17, 0.0  ;;  %vm356_vm3 = vcmp.eq.f32.partialorder %v268_v18, 0.0 }
  0x2e   : > { %v325_v47 = vand.u32 2147483648, %v265_v30  ;;  %v326_v48 = vand.u32 2147483648, %v266_v31  ;;  %v329_v49 = vand.u32 2147483648, %v708_v25  ;;  %v330_v50 = vand.u32 2147483648, %v710_v29  ;;  %s541_s18 = sshll.u32 (%p680_p6), %s615_s11, 5 }
  0x2f   : > { %vm353_vm4 = vcmp.eq.f32.partialorder %v265_v30, 0.0  ;;  %vm354_vm5 = vcmp.eq.f32.partialorder %v266_v31, 0.0  ;;  %vm357_vm6 = vcmp.eq.f32.partialorder %v708_v25, 0.0  ;;  %vm358_vm7 = vcmp.eq.f32.partialorder %v710_v29, 0.0  ;;  %s395_s23 = scalar_lea.vmem (%p680_p6), %s766_s2, %s541_s18 }
  0xa7   : > { %v296_v32 = vpop.permute.xlu1 %295  ;;  %v286_v33 = vpop.permute.xlu0 %285 }
  0xa8   : > { %v307_v36 = vsub.f32 %v275_v21, %v296_v32  ;;  %v308_v37 = vsub.f32 %v276_v22, %v296_v32  ;;  %v303_v38 = vsub.f32 %v271_v23, %v286_v33  ;;  %v304_v39 = vsub.f32 %v272_v24, %v286_v33 }
  0xaa   : > { %v311_v43 = vmax.f32 %v303_v38, %v307_v36  ;;  %v312_v44 = vmax.f32 %v304_v39, %v308_v37 }
  0xab   : > { %v301_v45 = vpop.permute.xlu1 %300  ;;  %v291_v46 = vpop.permute.xlu0 %290 }
  0xac   : > { %v335_v51 = vxor.u32 %v323_v26, %v311_v43  ;;  %v336_v52 = vxor.u32 %v324_v27, %v312_v44  ;;  %v339_v53 = vxor.u32 %v327_v28, %v311_v43  ;;  %v340_v54 = vxor.u32 %v328_v34, %v312_v44 }
  0xad   : > { %v309_v55 = vsub.f32 %v277_v35, %v301_v45  ;;  %v310_v56 = vsub.f32 %v278_v40, %v301_v45  ;;  %v305_v57 = vsub.f32 %v273_v41, %v291_v46  ;;  %v306_v58 = vsub.f32 %v274_v42, %v291_v46 }
  0xae   : > { %v359_v59 = vsel %vm351_vm0, 0.0, %v335_v51  ;;  %v360_v60 = vsel %vm352_vm1, 0.0, %v336_v52  ;;  %v363_v61 = vsel %vm355_vm2, 0.0, %v339_v53  ;;  %v364_v62 = vsel %vm356_vm3, 0.0, %v340_v54 }
  0xaf   : > { %v367_v63 = vadd.f32 %v359_v59, %v263_v19  ;;  %v368_v0 = vadd.f32 %v360_v60, %v264_v20  ;;  %v371_v1 = vadd.f32 %v363_v61, %v267_v17  ;;  %v372_v2 = vadd.f32 %v364_v62, %v268_v18 }
  0xb0   : > { %v313_v3 = vmax.f32 %v305_v57, %v309_v55  ;;  %v314_v4 = vmax.f32 %v306_v58, %v310_v56 }
  0xb1   : > { %375 = vst [vmem:[%s721_s9] sm:$0xff] %v367_v63  ;;  %376 = vst [vmem:[%s721_s9 + $0x8] sm:$0xff] %v368_v0 }
  0xb2   : > { %379 = vst [vmem:[%s721_s9 + $0x20] sm:$0xff] %v371_v1  ;;  %380 = vst [vmem:[%s721_s9 + $0x28] sm:$0xff] %v372_v2  ;;  %v337_v5 = vxor.u32 %v325_v47, %v313_v3  ;;  %v338_v6 = vxor.u32 %v326_v48, %v314_v4  ;;  %v341_v7 = vxor.u32 %v329_v49, %v313_v3  ;;  %389 = sbr.rel (!%p680_p6) target bundleno = 193 (0xc1), region = 93 }
  0xb3   : > { %v342_v8 = vxor.u32 %v330_v50, %v314_v4 }
  0xb4   : > { %v361_v9 = vsel %vm353_vm4, 0.0, %v337_v5  ;;  %v362_v10 = vsel %vm354_vm5, 0.0, %v338_v6  ;;  %v365_v11 = vsel %vm357_vm6, 0.0, %v341_v7 }
  0xb5   : > { %v366_v12 = vsel %vm358_vm7, 0.0, %v342_v8  ;;  %v369_v13 = vadd.f32 %v361_v9, %v265_v30  ;;  %v370_v14 = vadd.f32 %v362_v10, %v266_v31  ;;  %v373_v15 = vadd.f32 %v365_v11, %v708_v25 }
  0xb6   : > { %v374_v16 = vadd.f32 %v366_v12, %v710_v29 }
  0xb7   : > { %377 = vst [vmem:[%s721_s9 + $0x10] sm:$0xff] %v369_v13  ;;  %378 = vst [vmem:[%s721_s9 + $0x18] sm:$0xff] %v370_v14 }
  0xb8   : > { %381 = vst [vmem:[%s721_s9 + $0x30] sm:$0xff] %v373_v15  ;;  %382 = vst [vmem:[%s721_s9 + $0x38] sm:$0xff] %v374_v16  ;;  %v408_v17 = vld [vmem:[%s721_s9] sm:$0xff] (%p680_p6)  ;;  %v410_v18 = vld [vmem:[%s721_s9 + $0x8] sm:$0xff] (%p680_p6) }
  0xb9   : > { %v416_v21 = vld [vmem:[%s721_s9 + $0x20] sm:$0xff]  ;;  %v418_v22 = vld [vmem:[%s721_s9 + $0x28] sm:$0xff]  ;;  %409 = vst [vmem:[%s395_s23] sm:$0xff] %v408_v17  ;;  %411 = vst [vmem:[%s395_s23 + $0x8] sm:$0xff] %v410_v18 }
  0xba   : > { %417 = vst [vmem:[%s395_s23 + $0x40] sm:$0xff] %v416_v21  ;;  %419 = vst [vmem:[%s395_s23 + $0x48] sm:$0xff] %v418_v22 }
  0xbe   : > { %v412_v19 = vld [vmem:[%s721_s9 + $0x10] sm:$0xff]  ;;  %v414_v20 = vld [vmem:[%s721_s9 + $0x18] sm:$0xff] }
  0xbf   : > { %413 = vst [vmem:[%s395_s23 + $0x10] sm:$0xff] %v412_v19  ;;  %415 = vst [vmem:[%s395_s23 + $0x18] sm:$0xff] %v414_v20  ;;  %v420_v23 = vld [vmem:[%s721_s9 + $0x30] sm:$0xff]  ;;  %v422_v24 = vld [vmem:[%s721_s9 + $0x38] sm:$0xff] }
  0xc0   : > { %421 = vst [vmem:[%s395_s23 + $0x50] sm:$0xff] %v420_v23  ;;  %423 = vst [vmem:[%s395_s23 + $0x58] sm:$0xff] %v422_v24 }
  0xc1 PF: > { %s12_s13 = sadd.s32 1, %s623_s13   ;;  %s769_s9 = smov %s611_s10 }
  0xc2   : > { %p9_p11 = scmp.ge.s32.totalorder %s12_s13, 4   ;;  %s770_s10 = smov %s685_s20 }
  0xc3   : > { %s771_s11 = smov %s619_s12  ;;  %s772_s12 = smov %s774_s14 }
  0xc4   :  { %11 = sbr.rel (!%p9_p11) target bundleno = 3 (0x3), region = 155 }

// kernel: shrink_forward.4
= control target key start
LH: loop header
LB: loop body
LE: loop exit
PB: predicated region body
PF: predicated region fallthrough
CT: control target
= control target key end

     0   :  { %v382_v0 = vmov 0.0|0.0   ;;  %vm383_vm0 = vmmov 0   ;;  %v384_v4 = vmov 0.0   ;;  %s539_s1 = inlined_call_operand.vmem [shape: f32[128,128], index: 1, kind: input, shape index: {}]   ;;  %s540_s3 = inlined_call_operand.vmem [shape: f32[128,128], index: 3, kind: input, shape index: {}]   ;;  %s541_s0 = inlined_call_operand.vmem [shape: f32[8,128], index: 0, kind: input, shape index: {}]   ;;  %s542_s2 = inlined_call_operand.vmem [shape: f32[1,128], index: 2, kind: input, shape index: {}]   ;;  %s543_s4 = inlined_call_operand.vmem [shape: f32[1,128], index: 4, kind: input, shape index: {}]   ;;  %s544_s5 = inlined_call_operand.vmem [shape: f32[8,128], index: 5, kind: output, shape index: {}]  }
   0x1   :  { %327 = vmatprep.subr.bf16.mxu0 %v382_v0  ;;  %v21_v1 = vld [vmem:[%s539_s1] sm:$0xff]  ;;  %v22_v2 = vld [vmem:[%s539_s1 + $0x8] sm:$0xff]  ;;  %v23_v3 = vld [vmem:[%s539_s1 + $0x10] sm:$0xff]  ;;  %289 = vmatprep.mubr.msk.f32.mxu0 %vm383_vm0, %v384_v4 }
   0x2   :  { %v328_v5 = vpack.c.bf16 %v22_v2, %v21_v1  ;;  %v24_v6 = vld [vmem:[%s539_s1 + $0x18] sm:$0xff]  ;;  %351 = vmatprep.subr.bf16.mxu1 %v382_v0  ;;  %324 = vmatprep.mubr.msk.f32.mxu1 %vm383_vm0, %v384_v4  ;;  %v25_v8 = vld [vmem:[%s539_s1 + $0x20] sm:$0xff]  ;;  %v26_v9 = vld [vmem:[%s539_s1 + $0x28] sm:$0xff] }
   0x3   :  { %v331_v7 = vpack.c.bf16 %v24_v6, %v23_v3  ;;  %v115_v10 = vld [vmem:[%s540_s3] sm:$0xff]  ;;  %v116_v11 = vld [vmem:[%s540_s3 + $0x8] sm:$0xff]  ;;  %v117_v12 = vld [vmem:[%s540_s3 + $0x10] sm:$0xff]  ;;  %v334_v14 = vpack.c.bf16 %v26_v9, %v25_v8 }
   0x4   :  { %329 = vmatpush3.bf16.msra.mxu0 %v328_v5  ;;  %v118_v13 = vld [vmem:[%s540_s3 + $0x18] sm:$0xff]  ;;  %v352_v15 = vpack.c.bf16 %v116_v11, %v115_v10  ;;  %v27_v16 = vld [vmem:[%s539_s1 + $0x30] sm:$0xff]  ;;  %v119_v19 = vld [vmem:[%s540_s3 + $0x20] sm:$0xff] }
   0x5   :  { %330 = vmatprep.subr.bf16.mxu0 %v382_v0  ;;  %v28_v17 = vld [vmem:[%s539_s1 + $0x38] sm:$0xff]  ;;  %v355_v18 = vpack.c.bf16 %v118_v13, %v117_v12  ;;  %v120_v20 = vld [vmem:[%s540_s3 + $0x28] sm:$0xff]  ;;  %v29_v22 = vld [vmem:[%s539_s1 + $0x40] sm:$0xff] }
   0x6   :  { %353 = vmatpush3.bf16.msra.mxu1 %v352_v15  ;;  %v337_v21 = vpack.c.bf16 %v28_v17, %v27_v16  ;;  %v30_v23 = vld [vmem:[%s539_s1 + $0x48] sm:$0xff]  ;;  %v358_v24 = vpack.c.bf16 %v120_v20, %v119_v19  ;;  %v121_v25 = vld [vmem:[%s540_s3 + $0x30] sm:$0xff]  ;;  %v122_v26 = vld [vmem:[%s540_s3 + $0x38] sm:$0xff] }
   0x7   :  { %354 = vmatprep.subr.bf16.mxu1 %v382_v0  ;;  %v340_v27 = vpack.c.bf16 %v30_v23, %v29_v22  ;;  %v31_v28 = vld [vmem:[%s539_s1 + $0x50] sm:$0xff]  ;;  %v32_v29 = vld [vmem:[%s539_s1 + $0x58] sm:$0xff]  ;;  %v361_v30 = vpack.c.bf16 %v122_v26, %v121_v25  ;;  %v123_v31 = vld [vmem:[%s540_s3 + $0x40] sm:$0xff] }
   0x8   :  { %332 = vmatpush3.bf16.msra.mxu0 %v331_v7  ;;  %v124_v32 = vld [vmem:[%s540_s3 + $0x48] sm:$0xff]  ;;  %v343_v33 = vpack.c.bf16 %v32_v29, %v31_v28  ;;  %v33_v34 = vld [vmem:[%s539_s1 + $0x60] sm:$0xff]  ;;  %v125_v37 = vld [vmem:[%s540_s3 + $0x50] sm:$0xff] }
   0x9   :  { %333 = vmatprep.subr.bf16.mxu0 %v382_v0  ;;  %v34_v35 = vld [vmem:[%s539_s1 + $0x68] sm:$0xff]  ;;  %v364_v36 = vpack.c.bf16 %v124_v32, %v123_v31  ;;  %v126_v38 = vld [vmem:[%s540_s3 + $0x58] sm:$0xff]  ;;  %v35_v40 = vld [vmem:[%s539_s1 + $0x70] sm:$0xff] }
   0xa   :  { %356 = vmatpush3.bf16.msra.mxu1 %v355_v18  ;;  %v346_v39 = vpack.c.bf16 %v34_v35, %v33_v34  ;;  %v36_v41 = vld [vmem:[%s539_s1 + $0x78] sm:$0xff]  ;;  %v367_v42 = vpack.c.bf16 %v126_v38, %v125_v37  ;;  %v127_v43 = vld [vmem:[%s540_s3 + $0x60] sm:$0xff]  ;;  %v128_v44 = vld [vmem:[%s540_s3 + $0x68] sm:$0xff] }
   0xb   :  { %357 = vmatprep.subr.bf16.mxu1 %v382_v0  ;;  %v349_v45 = vpack.c.bf16 %v36_v41, %v35_v40  ;;  %v370_v46 = vpack.c.bf16 %v128_v44, %v127_v43  ;;  %v20_v47 = vld [vmem:[%s541_s0] sm:$0xff]  ;;  %v129_v48 = vld [vmem:[%s540_s3 + $0x70] sm:$0xff]  ;;  %v130_v49 = vld [vmem:[%s540_s3 + $0x78] sm:$0xff] }
   0xc   :  { %335 = vmatpush3.bf16.msra.mxu0 %v334_v14  ;;  %v373_v50 = vpack.c.bf16 %v130_v49, %v129_v48  ;;  %v220_v51 = vld [vmem:[%s542_s2] ss:$0 sm:$0xff] }
   0xd   :  { %336 = vmatprep.subr.bf16.mxu0 %v382_v0  ;;  %v221_v56 = vld [vmem:[%s543_s4] ss:$0 sm:$0xff] }
   0xe   :  { %359 = vmatpush3.bf16.msra.mxu1 %v358_v24 }
   0xf   :  { %360 = vmatprep.subr.bf16.mxu1 %v382_v0 }
  0x10   :  { %338 = vmatpush3.bf16.msra.mxu0 %v337_v21 }
  0x11   :  { %339 = vmatprep.subr.bf16.mxu0 %v382_v0 }
  0x12   :  { %362 = vmatpush3.bf16.msra.mxu1 %v361_v30 }
  0x13   :  { %363 = vmatprep.subr.bf16.mxu1 %v382_v0 }
  0x14   :  { %341 = vmatpush3.bf16.msra.mxu0 %v340_v27 }
  0x15   :  { %342 = vmatprep.subr.bf16.mxu0 %v382_v0 }
  0x16   :  { %365 = vmatpush3.bf16.msra.mxu1 %v364_v36 }
  0x17   :  { %366 = vmatprep.subr.bf16.mxu1 %v382_v0 }
  0x18   :  { %344 = vmatpush3.bf16.msra.mxu0 %v343_v33 }
  0x19   :  { %345 = vmatprep.subr.bf16.mxu0 %v382_v0 }
  0x1a   :  { %368 = vmatpush3.bf16.msra.mxu1 %v367_v42 }
  0x1b   :  { %369 = vmatprep.subr.bf16.mxu1 %v382_v0 }
  0x1c   :  { %347 = vmatpush3.bf16.msra.mxu0 %v346_v39 }
  0x1d   :  { %348 = vmatprep.subr.bf16.mxu0 %v382_v0 }
  0x1e   :  { %371 = vmatpush3.bf16.msra.mxu1 %v370_v46 }
  0x1f   :  { %372 = vmatprep.subr.bf16.mxu1 %v382_v0 }
  0x20   :  { %350 = vmatpush3.bf16.msra.mxu0 %v349_v45 }
  0x22   :  { %374 = vmatpush3.bf16.msra.mxu1 %v373_v50 }
  0x23   :  { %290 = vmatmul.mubr.f32.vlgmr.msra.gmra.mrb[0].mxu0 %v20_v47 }
  0xf6   :  { %v110_v52 = vpop.f32.mrb[0].mxu0 }
  0xf7   :  { %v111_v53 = vadd.f32 %v220_v51, %v110_v52  ;;  %v291_v54 = vpop.f32.mrb[1].mxu0 }
  0xf9   :  { %v114_v55 = vmax.f32 %v111_v53, 0.0 }
  0xfb   :  { %325 = vmatmul.mubr.f32.vlgmr.msra.gmra.mrb[0].mxu1 %v114_v55 }
 0x1ce   :  { %v204_v57 = vpop.f32.mrb[0].mxu1 }
 0x1cf   :  { %v205_v58 = vadd.f32 %v221_v56, %v204_v57  ;;  %v326_v59 = vpop.f32.mrb[1].mxu1 }
 0x1d1   :  { %v222_v60 = vmul.f32 -1.442695, %v205_v58 }
 0x1d3   :  { %378 = vpow2.f32 %v222_v60 }
 0x1dd   :  { %v379_v61 = vpop.eup %378 }
 0x1de   :  { %v211_v62 = vadd.f32 1.0, %v379_v61 }
 0x1e0   :  { %380 = vrcp.f32 %v211_v62 }
 0x1ea   :  { %v381_v63 = vpop.eup %380 }
 0x1eb   :  { %v214_v0 = vmul.f32 %v381_v63, %v20_v47 }
 0x1ed   :  { %215 = vst [vmem:[%s544_s5] sm:$0xff] %v214_v0 }

</bundles_post_ra>
